<compile_context>
chip_gen: v7x
topology: tpu7x:2x2x1
jax: 0.10.0
libtpu: 0.0.40
codegen_flags: <defaults>
</compile_context>

<pallas_src>
import jax
import jax.numpy as jnp
from jax.experimental import pallas as pl
from jax.experimental.pallas import tpu as pltpu


# ------------------------------ generation-aware knobs ------------------------------

def _vmem_limit_bytes():
    # ~75% of the chip's physical VMEM (≈48 MiB on v7x's 64 MiB, ≈96 MiB on v5e/v6e's
    # 128 MiB), with a conservative fallback if the query is unavailable.
    try:
        cap = int(pltpu.get_tpu_info().vmem_capacity_bytes)
    except Exception:
        cap = 64 * 1024 * 1024
    return int(min(max(16 * 1024 * 1024, (cap * 3) // 4), 120 * 1024 * 1024))


_VMEM_LIMIT = _vmem_limit_bytes()


def _cp(semantics):
    return pltpu.CompilerParams(dimension_semantics=semantics,
                                vmem_limit_bytes=_VMEM_LIMIT)


# ----------------------------------- tiling helpers ---------------------------------

def _round_up(x, m):
    return (x + m - 1) // m * m


def _row_tile(rows):
    # Prefer 512-row tiles (≈85% of HBM roofline measured) then 256, etc.; if the row
    # count has no clean divisor we pad instead of emitting one oversized block.
    for t in (512, 256, 128, 64, 32, 16, 8):
        if rows % t == 0:
            return t, rows
    t = min(256, pl.next_power_of_2(rows))
    return t, _round_up(rows, t)


def _seq_tile(t_len):
    for t in (512, 256, 128):
        if t_len % t == 0:
            return t
    return t_len  # small / odd T: full-extent tile (always layout-valid)


def _ffn_tile(f):
    # 512-1024 wide FFN chunks keep the GELU intermediate and streamed weight tiles small.
    for t in (1024, 512, 256, 128):
        if f % t == 0:
            return t
    return f


def _vocab_tile(v):
    for t in (1024, 512, 256, 128):
        if v % t == 0:
            return t, v
    if v <= 1024:
        return v, v           # tiny vocab: full-extent block
    t = 512
    return t, _round_up(v, t)  # pad wlm columns, slice logits back


def _full_spec(shape):
    n = len(shape)
    return pl.BlockSpec(shape, lambda *_: (0,) * n)


# ---------------------------------- in-kernel helpers --------------------------------

def _layernorm(x, w, b, eps=1e-5):
    # PyTorch nn.LayerNorm: biased variance, eps inside rsqrt.  Done in f32.
    mu = jnp.mean(x, axis=-1, keepdims=True)
    xc = x - mu
    var = jnp.mean(xc * xc, axis=-1, keepdims=True)
    return xc * jax.lax.rsqrt(var + eps) * w + b


def _gelu(x):
    # TODO(synk): PyTorch F.gelu default is the exact erf GELU; the tanh approximation
    # is used here to guarantee Mosaic lowering (diff ~1e-3).
    c = 0.7978845608028654  # sqrt(2/pi)
    return 0.5 * x * (1.0 + jnp.tanh(c * (x + 0.044715 * x * x * x)))


def _swap_heads(x):
    # (a, h, d) <-> (h, a, d): major/sublane swap done in VMEM (lane dim unchanged),
    # so the heads never round-trip HBM through an XLA transpose.
    if hasattr(pltpu, "einshape"):
        return pltpu.einshape("ahd->had", x)
    return jnp.swapaxes(x, 0, 1)


# ------------------------------ LN1 + fused QKV projection ---------------------------
# Row-tiled over the flattened (B*T) axis; one (D, 3D) matmul, weights stay resident.

def _qkv_kernel(x_ref, ln1w, ln1b, wqkv, bqkv, q_ref, k_ref, v_ref):
    d = q_ref.shape[-1]
    x = x_ref[...].astype(jnp.float32)                       # (TR, D)
    h = _layernorm(x, ln1w[...], ln1b[...]).astype(jnp.bfloat16)
    qkv = jnp.dot(h, wqkv[...], preferred_element_type=jnp.float32) + bqkv[...]
    q_ref[...] = qkv[:, 0:d].astype(q_ref.dtype)
    k_ref[...] = qkv[:, d:2 * d].astype(k_ref.dtype)
    v_ref[...] = qkv[:, 2 * d:3 * d].astype(v_ref.dtype)


def qkv_proj(x2d, blk):
    r0, d = x2d.shape
    tr, r = _row_tile(r0)
    if r != r0:
        x2d = jnp.pad(x2d, ((0, r - r0), (0, 0)))
    row = pl.BlockSpec((tr, d), lambda i: (i, 0))
    weights = [blk['ln1_w'], blk['ln1_b'], blk['wqkv'], blk['bqkv']]
    out = jax.ShapeDtypeStruct((r, d), jnp.bfloat16)
    # TODO(synk): for very large D, stream wqkv over an extra grid axis instead of
    # keeping the full (D, 3D) weight resident.
    q, k, v = pl.pallas_call(
        _qkv_kernel,
        out_shape=(out, out, out),
        grid=(r // tr,),
        in_specs=[row] + [_full_spec(w.shape) for w in weights],
        out_specs=(row, row, row),
        compiler_params=_cp(("parallel",)),
    )(x2d, *weights)
    if r != r0:
        q, k, v = q[:r0], k[:r0], v[:r0]
    return q, k, v


# --------------------------------- flash-style attention -----------------------------
# Grid (B, Tq tiles, Tk tiles); online softmax state in VMEM scratch.  Inputs/outputs
# are (B, T, H, hd) blocks (free reshape of the projection output, no HBM transposes).
# NOTE: the reference MultiHeadAttention applies NO causal mask, so none is applied.

def _attn_kernel(q_ref, k_ref, v_ref, y_ref, m_sc, l_sc, acc_sc):
    ki = pl.program_id(2)

    @pl.when(ki == 0)
    def _():
        m_sc[...] = jnp.full_like(m_sc, -jnp.inf)
        l_sc[...] = jnp.zeros_like(l_sc)
        acc_sc[...] = jnp.zeros_like(acc_sc)

    q = _swap_heads(q_ref[0])                                # (H, tq, hd) bf16
    k = _swap_heads(k_ref[0])                                # (H, tk, hd) bf16
    v = _swap_heads(v_ref[0])                                # (H, tk, hd) bf16

    # 1/sqrt(hd) is already folded into the q projection weights.
    s = jnp.einsum('hqd,hkd->hqk', q, k, preferred_element_type=jnp.float32)
    m_new = jnp.maximum(m_sc[...], jnp.max(s, axis=-1, keepdims=True))
    alpha = jnp.exp(m_sc[...] - m_new)
    p = jnp.exp(s - m_new)
    l_sc[...] = alpha * l_sc[...] + jnp.sum(p, axis=-1, keepdims=True)
    acc_sc[...] = alpha * acc_sc[...] + jnp.einsum(
        'hqk,hkd->hqd', p.astype(jnp.bfloat16), v, preferred_element_type=jnp.float32)
    m_sc[...] = m_new

    @pl.when(ki == pl.num_programs(2) - 1)
    def _():
        out = acc_sc[...] * (1.0 / l_sc[...])                # exact reciprocal
        y_ref[0] = _swap_heads(out).astype(y_ref.dtype)      # back to (tq, H, hd)


def attention(q2d, k2d, v2d, B, T, H, hd):
    d = H * hd
    q = q2d.reshape(B, T, H, hd)                             # free reshapes (no transpose)
    k = k2d.reshape(B, T, H, hd)
    v = v2d.reshape(B, T, H, hd)
    tq = _seq_tile(T)
    tk = _seq_tile(T)
    q_spec = pl.BlockSpec((1, tq, H, hd), lambda b, qi, ki: (b, qi, 0, 0))
    kv_spec = pl.BlockSpec((1, tk, H, hd), lambda b, qi, ki: (b, ki, 0, 0))
    y = pl.pallas_call(
        _attn_kernel,
        out_shape=jax.ShapeDtypeStruct((B, T, H, hd), jnp.bfloat16),
        grid=(B, T // tq, T // tk),
        in_specs=[q_spec, kv_spec, kv_spec],
        out_specs=pl.BlockSpec((1, tq, H, hd), lambda b, qi, ki: (b, qi, 0, 0)),
        scratch_shapes=[pltpu.VMEM((H, tq, 1), jnp.float32),
                        pltpu.VMEM((H, tq, 1), jnp.float32),
                        pltpu.VMEM((H, tq, hd), jnp.float32)],
        compiler_params=_cp(("parallel", "parallel", "arbitrary")),
    )(q, k, v)
    return y.reshape(B * T, d)


# -------------------- out-proj + residual + LN2 + MLP (FFN-dim streamed) --------------
# Grid (row tiles, FFN-hidden tiles).  wfc/wpj stream in tiles; residual / LN2 output
# are computed once per row tile (j == 0) and cached in scratch; GELU intermediate is
# bounded to (tr, tf) f32.

def _post_kernel(x_ref, y_ref, wo, bo, ln2w, ln2b, wfc, bfc, wpj, bpj,
                 o_ref, h_sc, acc_sc):
    j = pl.program_id(1)

    @pl.when(j == 0)
    def _():
        x = x_ref[...].astype(jnp.float32)                   # (TR, D) residual stream
        x = x + jnp.dot(y_ref[...], wo[...], preferred_element_type=jnp.float32) + bo[...]
        h_sc[...] = _layernorm(x, ln2w[...], ln2b[...]).astype(jnp.bfloat16)
        acc_sc[...] = x + bpj[...]                           # residual + c_proj bias

    f = jnp.dot(h_sc[...], wfc[...], preferred_element_type=jnp.float32) + bfc[...]
    f = _gelu(f).astype(jnp.bfloat16)
    acc_sc[...] += jnp.dot(f, wpj[...], preferred_element_type=jnp.float32)

    @pl.when(j == pl.num_programs(1) - 1)
    def _():
        o_ref[...] = acc_sc[...].astype(o_ref.dtype)


def post_block(x2d, y2d, blk):
    r0, d = x2d.shape
    f_dim = blk['wfc'].shape[1]
    tr, r = _row_tile(r0)
    tf = _ffn_tile(f_dim)
    if r != r0:
        x2d = jnp.pad(x2d, ((0, r - r0), (0, 0)))
        y2d = jnp.pad(y2d, ((0, r - r0), (0, 0)))
    row = pl.BlockSpec((tr, d), lambda i, j: (i, 0))
    # TODO(synk): wo is still fully resident; for very large D stream it like wfc/wpj.
    out = pl.pallas_call(
        _post_kernel,
        out_shape=jax.ShapeDtypeStruct((r, d), jnp.float32),
        grid=(r // tr, f_dim // tf),
        in_specs=[row, row,
                  _full_spec(blk['wo'].shape),
                  _full_spec(blk['bo'].shape),
                  _full_spec(blk['ln2_w'].shape),
                  _full_spec(blk['ln2_b'].shape),
                  pl.BlockSpec((d, tf), lambda i, j: (0, j)),
                  pl.BlockSpec((1, tf), lambda i, j: (0, j)),
                  pl.BlockSpec((tf, d), lambda i, j: (j, 0)),
                  _full_spec(blk['bpj'].shape)],
        out_specs=row,
        scratch_shapes=[pltpu.VMEM((tr, d), jnp.bfloat16),
                        pltpu.VMEM((tr, d), jnp.float32)],
        compiler_params=_cp(("parallel", "arbitrary")),
    )(x2d, y2d, blk['wo'], blk['bo'], blk['ln2_w'], blk['ln2_b'],
      blk['wfc'], blk['bfc'], blk['wpj'], blk['bpj'])
    return out[:r0] if r != r0 else out


# ------------------------------- final LN + lm_head ----------------------------------
# Grid (row tiles, vocab tiles).  LN computed once per row tile (vocab axis is the inner
# sequential axis) and cached as bf16; logits tiles are lane-dense.

def _lm_head_kernel(x_ref, lnfw, lnfb, wlm_ref, o_ref, h_sc):
    @pl.when(pl.program_id(1) == 0)
    def _():
        h_sc[...] = _layernorm(x_ref[...].astype(jnp.float32),
                               lnfw[...], lnfb[...]).astype(jnp.bfloat16)
    o_ref[...] = jnp.dot(h_sc[...], wlm_ref[...],
                         preferred_element_type=jnp.float32).astype(o_ref.dtype)


def lm_head(x2d, lnfw, lnfb, wlm):
    r0, d = x2d.shape
    v0 = wlm.shape[1]
    tr, r = _row_tile(r0)
    tv, v = _vocab_tile(v0)
    if r != r0:
        x2d = jnp.pad(x2d, ((0, r - r0), (0, 0)))
    if v != v0:
        wlm = jnp.pad(wlm, ((0, 0), (0, v - v0)))
    logits = pl.pallas_call(
        _lm_head_kernel,
        out_shape=jax.ShapeDtypeStruct((r, v), jnp.float32),
        grid=(r // tr, v // tv),
        in_specs=[pl.BlockSpec((tr, d), lambda i, j: (i, 0)),
                  _full_spec(lnfw.shape),
                  _full_spec(lnfb.shape),
                  pl.BlockSpec((d, tv), lambda i, j: (0, j))],
        out_specs=pl.BlockSpec((tr, tv), lambda i, j: (i, j)),
        scratch_shapes=[pltpu.VMEM((tr, d), jnp.bfloat16)],
        compiler_params=_cp(("parallel", "arbitrary")),
    )(x2d, lnfw, lnfb, wlm)
    return logits[:r0, :v0]


# ----------------------------------- transformer block --------------------------------

def transformer_block(x2d, blk, B, T, D, H):
    hd = D // H
    q2d, k2d, v2d = qkv_proj(x2d, blk)                       # bf16, scale folded into q
    y2d = attention(q2d, k2d, v2d, B, T, H, hd)              # bf16 (B*T, D)
    return post_block(x2d, y2d, blk)                         # f32 residual stream


# --------------------------------------- parameters -----------------------------------

def init_params(key, vocab, max_seq, D, H, L):
    """Mirrors DecoderOnlyTransformer._init_weights, then prepares the weights for the
    kernels: matmul weights as [in, out] bf16, QKV fused into one (D, 3D) matrix with
    1/sqrt(head_dim) folded into its q columns (and q bias)."""
    std = 0.02
    hd = D // H
    scale = 1.0 / (hd ** 0.5)
    keys = iter(jax.random.split(key, 3 + 4 * L))

    def nrm(shape):
        return jax.random.normal(next(keys), shape, jnp.float32) * std

    params = {
        'wte': nrm((vocab, D)),
        'wpe': nrm((max_seq, D)),
        'wlm': nrm((D, vocab)).astype(jnp.bfloat16),          # lm_head (no bias)
        'lnf_w': jnp.ones((1, D), jnp.float32),
        'lnf_b': jnp.zeros((1, D), jnp.float32),
        'blocks': [],
    }
    for _ in range(L):
        wqkv = nrm((D, 3 * D))
        wqkv = jnp.concatenate([wqkv[:, :D] * scale, wqkv[:, D:]], axis=1)
        params['blocks'].append({
            'ln1_w': jnp.ones((1, D), jnp.float32),
            'ln1_b': jnp.zeros((1, D), jnp.float32),
            'wqkv': wqkv.astype(jnp.bfloat16),                # scale folded into q columns
            'bqkv': jnp.zeros((1, 3 * D), jnp.float32),       # q part scaled too (zero anyway)
            'wo': nrm((D, D)).astype(jnp.bfloat16),
            'bo': jnp.zeros((1, D), jnp.float32),
            'ln2_w': jnp.ones((1, D), jnp.float32),
            'ln2_b': jnp.zeros((1, D), jnp.float32),
            'wfc': nrm((D, 4 * D)).astype(jnp.bfloat16),
            'bfc': jnp.zeros((1, 4 * D), jnp.float32),
            'wpj': nrm((4 * D, D)).astype(jnp.bfloat16),
            'bpj': jnp.zeros((1, D), jnp.float32),
        })
    return params


# ----------------------------------------- forward ------------------------------------

def decoder_forward(idx, params, D, H):
    B, T = idx.shape
    # TODO(synk): token/position embedding gather stays in XLA (no clean rectangular tile).
    tok_emb = params['wte'][idx]                              # (B, T, D)
    pos_emb = params['wpe'][:T][None, :, :]                   # (1, T, D)
    x = (tok_emb + pos_emb).astype(jnp.float32).reshape(B * T, D)   # dropout: identity (p=0)
    for blk in params['blocks']:
        x = transformer_block(x, blk, B, T, D, H)
    logits = lm_head(x, params['lnf_w'], params['lnf_b'], params['wlm'])
    return logits.reshape(B, T, -1)


# ------------------------------------------- main --------------------------------------

if __name__ == "__main__":
    # Small config: vocab=64, max_seq_len=16, dim=32, heads=4, layers=2, dropout=0.0
    VOCAB, MAX_SEQ, DIM, HEADS, LAYERS = 64, 16, 32, 4, 2
    B, T = 2, 8

    key = jax.random.PRNGKey(0)
    k_params, k_idx = jax.random.split(key)
    params = init_params(k_params, VOCAB, MAX_SEQ, DIM, HEADS, LAYERS)
    idx = jax.random.randint(k_idx, (B, T), 0, VOCAB, dtype=jnp.int32)

    logits = decoder_forward(idx, params, DIM, HEADS)
    logits = jax.block_until_ready(logits)

    assert logits.shape == (B, T, VOCAB), logits.shape
    assert bool(jnp.all(jnp.isfinite(logits)))
    print("KERNEL_OK")
</pallas_src>

<mosaic_0001>
module attributes {stable_mosaic.version = 11 : i64} {
  func.func @_qkv_kernel(%arg0: i32, %arg1: memref<16x32xf32, #tpu.memory_space<vmem>>, %arg2: memref<1x32xf32, #tpu.memory_space<vmem>>, %arg3: memref<1x32xf32, #tpu.memory_space<vmem>>, %arg4: memref<32x96xbf16, #tpu.memory_space<vmem>>, %arg5: memref<1x96xf32, #tpu.memory_space<vmem>>, %arg6: memref<16x32xbf16, #tpu.memory_space<vmem>>, %arg7: memref<16x32xbf16, #tpu.memory_space<vmem>>, %arg8: memref<16x32xbf16, #tpu.memory_space<vmem>>) attributes {dimension_semantics = [#tpu.dimension_semantics<parallel>], iteration_bounds = array<i64: 1>, scalar_prefetch = 0 : i64, scratch_operands = 0 : i64, tpu.core_type = #tpu.core_type<tc>, window_params = [{transform_indices = @transform_0, window_bounds = array<i64: 16, 32>}, {pipeline_mode = #tpu.pipeline_mode<synchronous>, transform_indices = @transform_1, window_bounds = array<i64: 1, 32>}, {pipeline_mode = #tpu.pipeline_mode<synchronous>, transform_indices = @transform_2, window_bounds = array<i64: 1, 32>}, {pipeline_mode = #tpu.pipeline_mode<synchronous>, transform_indices = @transform_3, window_bounds = array<i64: 32, 96>}, {pipeline_mode = #tpu.pipeline_mode<synchronous>, transform_indices = @transform_4, window_bounds = array<i64: 1, 96>}, {transform_indices = @transform_5, window_bounds = array<i64: 16, 32>}, {transform_indices = @transform_6, window_bounds = array<i64: 16, 32>}, {transform_indices = @transform_7, window_bounds = array<i64: 16, 32>}]} {
    %c0 = arith.constant 0 : index
    %c0_0 = arith.constant 0 : index
    %0 = vector.load %arg1[%c0, %c0_0] : memref<16x32xf32, #tpu.memory_space<vmem>>, vector<16x32xf32>
    %c0_1 = arith.constant 0 : index
    %c0_2 = arith.constant 0 : index
    %1 = vector.load %arg2[%c0_1, %c0_2] : memref<1x32xf32, #tpu.memory_space<vmem>>, vector<1x32xf32>
    %c0_3 = arith.constant 0 : index
    %c0_4 = arith.constant 0 : index
    %2 = vector.load %arg3[%c0_3, %c0_4] : memref<1x32xf32, #tpu.memory_space<vmem>>, vector<1x32xf32>
    %cst = arith.constant dense<0.000000e+00> : vector<16xf32>
    %3 = vector.multi_reduction <add>, %0, %cst [1] : vector<16x32xf32> to vector<16xf32>
    %4 = vector.shape_cast %3 : vector<16xf32> to vector<16x1xf32>
    %cst_5 = arith.constant 3.200000e+01 : f32
    %5 = vector.broadcast %cst_5 : f32 to vector<16x1xf32>
    %6 = arith.divf %4, %5 : vector<16x1xf32>
    %7 = vector.broadcast %6 : vector<16x1xf32> to vector<16x32xf32>
    %8 = arith.subf %0, %7 : vector<16x32xf32>
    %9 = arith.mulf %8, %8 : vector<16x32xf32>
    %cst_6 = arith.constant dense<0.000000e+00> : vector<16xf32>
    %10 = vector.multi_reduction <add>, %9, %cst_6 [1] : vector<16x32xf32> to vector<16xf32>
    %11 = vector.shape_cast %10 : vector<16xf32> to vector<16x1xf32>
    %cst_7 = arith.constant 3.200000e+01 : f32
    %12 = vector.broadcast %cst_7 : f32 to vector<16x1xf32>
    %13 = arith.divf %11, %12 : vector<16x1xf32>
    %cst_8 = arith.constant 9.99999974E-6 : f32
    %14 = vector.broadcast %cst_8 : f32 to vector<16x1xf32>
    %15 = arith.addf %13, %14 : vector<16x1xf32>
    %16 = math.rsqrt %15 : vector<16x1xf32>
    %17 = vector.broadcast %16 : vector<16x1xf32> to vector<16x32xf32>
    %18 = arith.mulf %8, %17 : vector<16x32xf32>
    %19 = vector.broadcast %1 : vector<1x32xf32> to vector<16x32xf32>
    %20 = arith.mulf %18, %19 : vector<16x32xf32>
    %21 = vector.broadcast %2 : vector<1x32xf32> to vector<16x32xf32>
    %22 = arith.addf %20, %21 : vector<16x32xf32>
    %23 = arith.truncf %22 : vector<16x32xf32> to vector<16x32xbf16>
    %c0_9 = arith.constant 0 : index
    %c0_10 = arith.constant 0 : index
    %24 = vector.load %arg4[%c0_9, %c0_10] : memref<32x96xbf16, #tpu.memory_space<vmem>>, vector<32x96xbf16>
    %cst_11 = arith.constant dense<0.000000e+00> : vector<16x96xf32>
    %25 = tpu.matmul %23, %24, %cst_11 {dimension_numbers = #tpu.dot_dimension_numbers<[1], [0], [0], [1], [0, 0, 1, 1], [], []>} : vector<16x32xbf16>, vector<32x96xbf16>, vector<16x96xf32> -> vector<16x96xf32>
    %c0_12 = arith.constant 0 : index
    %c0_13 = arith.constant 0 : index
    %26 = vector.load %arg5[%c0_12, %c0_13] : memref<1x96xf32, #tpu.memory_space<vmem>>, vector<1x96xf32>
    %27 = vector.broadcast %26 : vector<1x96xf32> to vector<16x96xf32>
    %28 = arith.addf %25, %27 : vector<16x96xf32>
    %29 = vector.extract_strided_slice %28 {offsets = [0, 0], sizes = [16, 32], strides = [1, 1]} : vector<16x96xf32> to vector<16x32xf32>
    %30 = arith.truncf %29 : vector<16x32xf32> to vector<16x32xbf16>
    %c0_14 = arith.constant 0 : index
    %c0_15 = arith.constant 0 : index
    %31 = vector.load %arg6[%c0_14, %c0_15] : memref<16x32xbf16, #tpu.memory_space<vmem>>, vector<16x32xbf16>
    tpu.vector_store %arg6[%c0_14, %c0_15], %30 {strides = array<i32>} : memref<16x32xbf16, #tpu.memory_space<vmem>>, vector<16x32xbf16>,
    %32 = vector.extract_strided_slice %28 {offsets = [0, 32], sizes = [16, 32], strides = [1, 1]} : vector<16x96xf32> to vector<16x32xf32>
    %33 = arith.truncf %32 : vector<16x32xf32> to vector<16x32xbf16>
    %c0_16 = arith.constant 0 : index
    %c0_17 = arith.constant 0 : index
    %34 = vector.load %arg7[%c0_16, %c0_17] : memref<16x32xbf16, #tpu.memory_space<vmem>>, vector<16x32xbf16>
    tpu.vector_store %arg7[%c0_16, %c0_17], %33 {strides = array<i32>} : memref<16x32xbf16, #tpu.memory_space<vmem>>, vector<16x32xbf16>,
    %35 = vector.extract_strided_slice %28 {offsets = [0, 64], sizes = [16, 32], strides = [1, 1]} : vector<16x96xf32> to vector<16x32xf32>
    %36 = arith.truncf %35 : vector<16x32xf32> to vector<16x32xbf16>
    %c0_18 = arith.constant 0 : index
    %c0_19 = arith.constant 0 : index
    %37 = vector.load %arg8[%c0_18, %c0_19] : memref<16x32xbf16, #tpu.memory_space<vmem>>, vector<16x32xbf16>
    tpu.vector_store %arg8[%c0_18, %c0_19], %36 {strides = array<i32>} : memref<16x32xbf16, #tpu.memory_space<vmem>>, vector<16x32xbf16>,
    return
  }
  func.func @transform_0(%arg0: i32) -> (i32, i32) {
    %c0_i32 = arith.constant 0 : i32
    %c0_i32_0 = arith.constant 0 : i32
    return %arg0, %c0_i32 : i32, i32
  }
  func.func @transform_1(%arg0: i32) -> (i32, i32) {
    %c0_i32 = arith.constant 0 : i32
    %c0_i32_0 = arith.constant 0 : i32
    %c0_i32_1 = arith.constant 0 : i32
    return %c0_i32, %c0_i32_0 : i32, i32
  }
  func.func @transform_2(%arg0: i32) -> (i32, i32) {
    %c0_i32 = arith.constant 0 : i32
    %c0_i32_0 = arith.constant 0 : i32
    %c0_i32_1 = arith.constant 0 : i32
    return %c0_i32, %c0_i32_0 : i32, i32
  }
  func.func @transform_3(%arg0: i32) -> (i32, i32) {
    %c0_i32 = arith.constant 0 : i32
    %c0_i32_0 = arith.constant 0 : i32
    %c0_i32_1 = arith.constant 0 : i32
    return %c0_i32, %c0_i32_0 : i32, i32
  }
  func.func @transform_4(%arg0: i32) -> (i32, i32) {
    %c0_i32 = arith.constant 0 : i32
    %c0_i32_0 = arith.constant 0 : i32
    %c0_i32_1 = arith.constant 0 : i32
    return %c0_i32, %c0_i32_0 : i32, i32
  }
  func.func @transform_5(%arg0: i32) -> (i32, i32) {
    %c0_i32 = arith.constant 0 : i32
    %c0_i32_0 = arith.constant 0 : i32
    return %arg0, %c0_i32 : i32, i32
  }
  func.func @transform_6(%arg0: i32) -> (i32, i32) {
    %c0_i32 = arith.constant 0 : i32
    %c0_i32_0 = arith.constant 0 : i32
    return %arg0, %c0_i32 : i32, i32
  }
  func.func @transform_7(%arg0: i32) -> (i32, i32) {
    %c0_i32 = arith.constant 0 : i32
    %c0_i32_0 = arith.constant 0 : i32
    return %arg0, %c0_i32 : i32, i32
  }
}

</mosaic_0001>

<bundles_post_ra>
// kernel: tpu_custom_call.1
= control target key start
LH: loop header
LB: loop body
LE: loop exit
PB: predicated region body
PF: predicated region fallthrough
CT: control target
= control target key end

     0   :  { %13 = vsyncpa [#allocation3], 0  ;;  %s549_s0 = inlined_call_operand.hbm [shape: f32[16,32], index: 0, kind: input, shape index: {}]   ;;  %s550_s1 = inlined_call_operand.vmem [shape: f32[1,32], index: 1, kind: input, shape index: {}]   ;;  %s551_s2 = inlined_call_operand.vmem [shape: f32[1,32], index: 2, kind: input, shape index: {}]   ;;  %s552_s3 = inlined_call_operand.hbm [shape: bf16[32,96], index: 3, kind: input, shape index: {}]   ;;  %s553_s4 = inlined_call_operand.vmem [shape: f32[1,96], index: 4, kind: input, shape index: {}]   ;;  %s554_s5 = inlined_call_operand.hbm [shape: bf16[16,32], index: 5, kind: output, shape index: {0}]   ;;  %s555_s6 = inlined_call_operand.hbm [shape: bf16[16,32], index: 6, kind: output, shape index: {1}]   ;;  %s556_s7 = inlined_call_operand.hbm [shape: bf16[16,32], index: 7, kind: output, shape index: {2}]  }
   0x1   :  { %14 = vsyncpa [#allocation6], 0 }
   0x2   :  { %15 = vsyncpa [#allocation4], 0 }
   0x3   :  { %16 = vsyncpa [#allocation9], 0  ;;  %s403_s24 = smov [#allocation2]   ;;  %s285_s28 = scalar_lea.hbm %s549_s0, 256 }
   0x4   :  { %s22_s25 = sshll.u32 %s403_s24, 4  ;;  %p286_p0 = scmp.ne.s32.totalorder %s549_s0, %s285_s28  ;;  %s23_s25 = int_to_ptr.vmem [resolvable:$true] %s22_s25 }
   0x5   :  { %p289_p1 = scmp.lt.u32.totalorder %s285_s28, %s549_s0 }
   0x7   :  { %p291_p2 = pnand %p289_p1, %p286_p0 }
   0x9   :  { %294 = shalt.err (!%p291_p2)
}
   0xa   :  { %s295_s10 = scalar_lea.vmem %s23_s25, 256  ;;  %p300_p4 = scmp.lt.s32.totalorder %s23_s25, %s23_s25 }
   0xb   :  { %p296_p3 = scmp.ne.s32.totalorder %s23_s25, %s295_s10  ;;  %p301_p5 = scmp.lt.s32.totalorder %s295_s10, %s295_s10 }
   0xd   :  { %p302_p6 = por %p301_p5, %p300_p4 }
   0xf   :  { %p303_p7 = pnand %p302_p6, %p296_p3 }
  0x11   :  { %306 = shalt.err (!%p303_p7)
}
  0x12   :  { %s404_s11 = smov 128   ;;  %s405_s12 = smov 8  }
  0x13   :  { %28 = dma.hbm_to_vmem [thread:$0]  %s549_s0, 256, %s23_s25, [#allocation3], %s404_s11, %s404_s11, %s405_s12  }
  0x14   :  { %s406_s15 = smov [#allocation5]   ;;  %s307_s19 = scalar_lea.hbm %s552_s3, 256 }
  0x15   :  { %s38_s16 = sshll.u32 %s406_s15, 4  ;;  %p308_p8 = scmp.ne.s32.totalorder %s552_s3, %s307_s19  ;;  %s39_s16 = int_to_ptr.vmem [resolvable:$true] %s38_s16 }
  0x16   :  { %p311_p9 = scmp.lt.u32.totalorder %s307_s19, %s552_s3 }
  0x18   :  { %p313_p10 = pnand %p311_p9, %p308_p8 }
  0x1a   :  { %316 = shalt.err (!%p313_p10)
}
  0x1b   :  { %s317_s24 = scalar_lea.vmem %s39_s16, 256  ;;  %p322_p12 = scmp.lt.s32.totalorder %s39_s16, %s39_s16 }
  0x1c   :  { %p318_p11 = scmp.ne.s32.totalorder %s39_s16, %s317_s24  ;;  %p323_p13 = scmp.lt.s32.totalorder %s317_s24, %s317_s24 }
  0x1e   :  { %p324_p0 = por %p323_p13, %p322_p12 }
  0x20   :  { %p325_p1 = pnand %p324_p0, %p318_p11 }
  0x22   :  { %328 = shalt.err (!%p325_p1)
}
  0x23   :  { %s407_s0 = smov 64   ;;  %s408_s25 = smov 4  }
  0x24   :  { %44 = dma.hbm_to_vmem [thread:$0]  %s552_s3, 256, %s39_s16, [#allocation6], %s407_s0, %s407_s0, %s408_s25  }
  0x25   :  { %395 = dma.done.wait [#allocation3], 256  }
  0x26   :  { %396 = vsyncadd [#allocation3], 4294967040 }
  0x27   :  { %397 = dma.done.wait [#allocation6], 256  }
  0x28   :  { %398 = vsyncadd [#allocation6], 4294967040  ;;  %vm58_vm0 = vcmask 261120   ;;  %v54_v0 = vld [vmem:[#allocation2] sm:$0xff]  ;;  %v55_v1 = vld [vmem:[#allocation2 + $0x8] sm:$0xff]  ;;  %v409_v15 = vmov 0.0  }
  0x29   :  { %v59_v2 = vsel %vm58_vm0, %v54_v0, 0.0  ;;  %v62_v3 = vsel %vm58_vm0, %v55_v1, 0.0  ;;  %v279_v14 = vld [vmem:[#allocation5] sm:$0xff]   ;;  %259 = vmatprep.subr.bf16.mxu0 %v409_v15  ;;  %v280_v16 = vld [vmem:[#allocation5 + $0x8] sm:$0xff]   ;;  %vm410_vm1 = vmmov 0   ;;  %vm178_vm2 = vcmask 257024  }
  0x2a   :  { %60 = vadd.xlane.f32.xlu0 %v59_v2  ;;  %260 = vmatpush3.bf16.msra.mxu0 %v279_v14  ;;  %v246_v25 = vld [vmem:[%s550_s1] ss:$0 sm:$0xff]  ;;  %s411_s1 = smov [#allocation7]  }
  0x2b   :  { %263 = vmatprep.mubr.msk.bf16.mxu0 %vm410_vm1, %v409_v15  ;;  %261 = vmatprep.subr.bf16.mxu0 %v409_v15  ;;  %v247_v29 = vld [vmem:[%s551_s2] ss:$0 sm:$0xff]  ;;  %s202_s10 = sshll.u32 %s411_s1, 4  ;;  %s412_s2 = smov 96   ;;  %s203_s10 = int_to_ptr.vmem [resolvable:$true] %s202_s10 }
  0x2c   :  { %v248_v34 = vld [vmem:[%s553_s4] ss:$0 sm:$0xff]  ;;  %s329_s4 = scalar_lea.vmem %s203_s10, 128  ;;  %p334_p3 = scmp.lt.s32.totalorder %s203_s10, %s203_s10 }
  0x2d   :  { %p330_p2 = scmp.ne.s32.totalorder %s203_s10, %s329_s4  ;;  %p335_p4 = scmp.lt.s32.totalorder %s329_s4, %s329_s4 }
  0x2e   :  { %63 = vadd.xlane.f32.xlu0 %v62_v3  ;;  %262 = vmatpush3.bf16.msra.mxu0 %v280_v16 }
  0x2f   :  { %p336_p5 = por %p335_p4, %p334_p3 }
  0x31   :  { %p337_p6 = pnand %p336_p5, %p330_p2 }
  0xb7   :  { %v61_v4 = vpop.xlane.xlu0 %60 }
  0xb8   :  { %v66_v5 = vmul.f32 0.03125, %v61_v4 }
  0xba   :  { %v68_v6 = vsub.f32 %v54_v0, %v66_v5 }
  0xbb   :  { %v64_v7 = vpop.xlane.xlu0 %63 }
  0xbc   :  { %v67_v8 = vmul.f32 0.03125, %v64_v7  ;;  %v70_v9 = vmul.f32 %v68_v6, %v68_v6 }
  0xbe   :  { %v69_v10 = vsub.f32 %v55_v1, %v67_v8  ;;  %v72_v11 = vsel %vm58_vm0, %v70_v9, 0.0 }
  0xbf   :  { %73 = vadd.xlane.f32.xlu1 %v72_v11 }
  0xc0   :  { %v71_v12 = vmul.f32 %v69_v10, %v69_v10 }
  0xc2   :  { %v75_v13 = vsel %vm58_vm0, %v71_v12, 0.0 }
  0xc3   :  { %76 = vadd.xlane.f32.xlu1 %v75_v13 }
 0x14c   :  { %v74_v17 = vpop.xlane.xlu1 %73 }
 0x14d   :  { %v78_v18 = vmul.f32 0.03125, %v74_v17 }
 0x14f   :  { %v80_v19 = vadd.f32 1e-05, %v78_v18 }
 0x150   :  { %v77_v20 = vpop.xlane.xlu1 %76 }
 0x151   :  { %281 = vrsqrt.f32 %v80_v19  ;;  %v79_v21 = vmul.f32 0.03125, %v77_v20 }
 0x153   :  { %v81_v22 = vadd.f32 1e-05, %v79_v21 }
 0x155   :  { %283 = vrsqrt.f32 %v81_v22 }
 0x15b   :  { %v282_v23 = vpop.eup %281 }
 0x15c   :  { %v84_v24 = vmul.f32 %v282_v23, %v68_v6 }
 0x15e   :  { %v92_v28 = vmul.f32 %v246_v25, %v84_v24 }
 0x15f   :  { %v284_v26 = vpop.eup %283 }
 0x160   :  { %v85_v27 = vmul.f32 %v284_v26, %v69_v10  ;;  %v100_v31 = vadd.f32 %v247_v29, %v92_v28 }
 0x162   :  { %v93_v30 = vmul.f32 %v246_v25, %v85_v27 }
 0x164   :  { %v101_v32 = vadd.f32 %v247_v29, %v93_v30 }
 0x166   :  { %v102_v33 = vpack.c.bf16 %v101_v32, %v100_v31 }
 0x168   :  { %264 = vmatmul.mubr.msk.bf16.vlgmr.msra.gmra.mrb[0].mxu0 %vm58_vm0, %v102_v33 }
 0x23b   :  { %v163_v35 = vpop.f32.mrb[0].mxu0 }
 0x23c   :  { %v164_v36 = vadd.f32 %v248_v34, %v163_v35  ;;  %v265_v37 = vpop.f32.mrb[1].mxu0 }
 0x23d   :  { %v166_v38 = vpop.f32.mrb[2].mxu0 }
 0x23e   :  { %v254_v39 = vpack.c.bf16 %v164_v36, %v164_v36  ;;  %v167_v40 = vadd.f32 %v248_v34, %v166_v38  ;;  %v266_v41 = vpop.f32.mrb[3].mxu0 }
 0x240   :  { %v255_v42 = vpack.c.bf16 %v167_v40, %v167_v40  ;;  %189 = vrot.lane.b32.xlu1 %v254_v39, %s407_s0  ;;  %181 = vrot.lane.b32.xlu0 %v254_v39, %s412_s2  ;;  %179 = vst.msk [vmem:[#allocation7] sm:$0xf] %vm178_vm2, %v254_v39 }
 0x242   :  { %180 = vst.msk [vmem:[#allocation7 + $0x4] sm:$0xf] %vm178_vm2, %v255_v42 }
 0x243   :  { %340 = shalt.err (!%p337_p6)
}
 0x244   :  { %s341_s13 = scalar_lea.hbm %s554_s5, 128 }
 0x245   :  { %p342_p7 = scmp.ne.s32.totalorder %s554_s5, %s341_s13  ;;  %p345_p8 = scmp.lt.u32.totalorder %s341_s13, %s554_s5 }
 0x247   :  { %p347_p9 = pnand %p345_p8, %p342_p7 }
 0x249   :  { %350 = shalt.err (!%p347_p9)
}
 0x24a   :  { %208 = dma.vmem_to_hbm [thread:$0]  %s203_s10, 128, %s554_s5, [#allocation4], %s407_s0, %s407_s0, %s408_s25  }
 0x24b   :  { %183 = vrot.lane.b32.xlu1 %v255_v42, %s412_s2  ;;  %s413_s20 = smov [#allocation8]   ;;  %s414_s22 = smov [#allocation10]  }
 0x24c   :  { %s214_s21 = sshll.u32 %s413_s20, 4  ;;  %s226_s23 = sshll.u32 %s414_s22, 4  ;;  %s215_s21 = int_to_ptr.vmem [resolvable:$true] %s214_s21  ;;  %s227_s23 = int_to_ptr.vmem [resolvable:$true] %s226_s23 }
 0x24d   :  { %s351_s24 = scalar_lea.vmem %s215_s21, 128  ;;  %p356_p11 = scmp.lt.s32.totalorder %s215_s21, %s215_s21 }
 0x24e   :  { %p352_p10 = scmp.ne.s32.totalorder %s215_s21, %s351_s24  ;;  %p357_p12 = scmp.lt.s32.totalorder %s351_s24, %s351_s24 }
 0x24f   :  { %191 = vrot.lane.b32.xlu1 %v255_v42, %s407_s0 }
 0x250   :  { %p358_p13 = por %p357_p12, %p356_p11 }
 0x252   :  { %p359_p0 = pnand %p358_p13, %p352_p10 }
 0x2b2   :  { %v190_v43 = vpop.permute.xlu1 %189  ;;  %v182_v44 = vpop.permute.xlu0 %181 }
 0x2b3   :  { %195 = vst.msk [vmem:[#allocation10] sm:$0xf] %vm178_vm2, %v190_v43  ;;  %187 = vst.msk [vmem:[#allocation8] sm:$0xf] %vm178_vm2, %v182_v44 }
 0x2bd   :  { %v184_v45 = vpop.permute.xlu1 %183 }
 0x2be   :  { %188 = vst.msk [vmem:[#allocation8 + $0x4] sm:$0xf] %vm178_vm2, %v184_v45 }
 0x2bf   :  { %362 = shalt.err (!%p359_p0)
}
 0x2c0   :  { %s363_s27 = scalar_lea.hbm %s555_s6, 128 }
 0x2c1   :  { %p364_p1 = scmp.ne.s32.totalorder %s555_s6, %s363_s27  ;;  %p367_p2 = scmp.lt.u32.totalorder %s363_s27, %s555_s6 }
 0x2c3   :  { %p369_p3 = pnand %p367_p2, %p364_p1 }
 0x2c5   :  { %372 = shalt.err (!%p369_p3)
}
 0x2c6   :  { %220 = dma.vmem_to_hbm [thread:$0]  %s215_s21, 128, %s555_s6, [#allocation9], %s407_s0, %s407_s0, %s408_s25   ;;  %v192_v46 = vpop.permute.xlu1 %191 }
 0x2c7   :  { %196 = vst.msk [vmem:[#allocation10 + $0x4] sm:$0xf] %vm178_vm2, %v192_v46  ;;  %s373_s1 = scalar_lea.vmem %s227_s23, 128  ;;  %p378_p5 = scmp.lt.s32.totalorder %s227_s23, %s227_s23 }
 0x2c8   :  { %p374_p4 = scmp.ne.s32.totalorder %s227_s23, %s373_s1  ;;  %p379_p6 = scmp.lt.s32.totalorder %s373_s1, %s373_s1 }
 0x2ca   :  { %p380_p7 = por %p379_p6, %p378_p5 }
 0x2cc   :  { %p381_p8 = pnand %p380_p7, %p374_p4 }
 0x2ce   :  { %384 = shalt.err (!%p381_p8)
}
 0x2cf   :  { %s385_s4 = scalar_lea.hbm %s556_s7, 128 }
 0x2d0   :  { %p386_p9 = scmp.ne.s32.totalorder %s556_s7, %s385_s4  ;;  %p389_p10 = scmp.lt.u32.totalorder %s385_s4, %s556_s7 }
 0x2d2   :  { %p391_p11 = pnand %p389_p10, %p386_p9 }
 0x2d4   :  { %394 = shalt.err (!%p391_p11)
}
 0x2d5   :  { %232 = dma.vmem_to_hbm [thread:$0]  %s227_s23, 128, %s556_s7, [#allocation9], %s407_s0, %s407_s0, %s408_s25  }
 0x2d6   :  { %399 = dma.done.wait [#allocation4], 128  }
 0x2d7   :  { %400 = vsyncadd [#allocation4], 4294967168 }
 0x2d8   :  { %401 = dma.done.wait [#allocation9], 256  }
 0x2d9   :  { %402 = vsyncadd [#allocation9], 4294967040 }
 0x2da   :  { %242 = vsyncpa [#allocation3], 1 }
 0x2db   :  { %243 = vsyncpa [#allocation6], 1 }
 0x2dc   :  { %244 = vsyncpa [#allocation4], 1 }
 0x2dd   :  { %245 = vsyncpa [#allocation9], 1 }

</bundles_post_ra>
